<compile_context>
chip_gen: v7x
topology: tpu7x:2x2x1
jax: 0.10.0
libtpu: 0.0.40
codegen_flags: <defaults>
</compile_context>

<pallas_src>
import functools

import jax
import jax.numpy as jnp
import numpy as np
from jax.experimental import pallas as pl
from jax.experimental.pallas import tpu as pltpu


# shift (dr, dc) -> row index in the precomputed border-validity mask table
_SHIFTS = [(dr, dc) for dr in (-1, 0, 1) for dc in (-1, 0, 1) if (dr, dc) != (0, 0)]
_MASK_IDX = {sh: i for i, sh in enumerate(_SHIFTS)}


# ----------------------------------------------------------------------------- kernel
def _residual_kernel(planes_ref, masks_ref, w1_ref, b1_ref, w2_ref, b2_ref,
                     *rest, W1, stride, downsample):
    """One grid step == NB batch elements, fully channel-major.

    planes_ref : (1, P, Cin, L)   input parity planes (P = stride*stride),
                                  L = NB*H1*W1 padded to a multiple of 128
    masks_ref  : (8, L)           border-validity mask per nonzero (dr, dc)
    w1_ref     : (9, Ch, Cin)     conv1 weights, tap-major, BN1 scale folded in
    w2_ref     : (9, Ch, Ch)      conv2 weights, BN2 scale folded in
    wd_ref     : (Ch, Cin)        downsample 1x1 weights (only when downsample)
    b*_ref     : (Ch, 1) f32      folded BatchNorm bias
    o_ref      : (1, Ch, L)       lane-dense f32 output
    """
    if downsample:
        wd_ref, bd_ref, o_ref = rest
    else:
        (o_ref,) = rest

    planes = planes_ref[0]            # (P, Cin, L), compute dtype (bf16 or f32)
    masks = masks_ref[...]            # (8, L), compute dtype
    L = planes.shape[-1]
    cdtype = w2_ref.dtype

    def shifted_tap(plane, dr, dc):
        # tap[c, m] = plane[c, m + dr*W1 + dc], zeroed outside the (H1, W1) tile.
        # Wrapped lanes (cross-row / cross-batch / pad) are exactly the masked ones.
        sf = dr * W1 + dc
        t = plane if sf == 0 else pltpu.roll(plane, (-sf) % L, axis=1)  # XLU vrot
        if (dr, dc) != (0, 0):
            k = _MASK_IDX[(dr, dc)]
            t = t * masks[k:k + 1, :]
        return t

    # ---- conv1 (3x3, stride folded into parity planes): 9 dot-accumulates ----
    acc1 = None
    for kh in range(3):
        ph = (kh - 1) % stride
        dr = (kh - 1 - ph) // stride
        for kw in range(3):
            pw = (kw - 1) % stride
            dc = (kw - 1 - pw) // stride
            tap = shifted_tap(planes[ph * stride + pw], dr, dc)
            d = jnp.dot(w1_ref[kh * 3 + kw], tap,
                        preferred_element_type=jnp.float32)
            acc1 = d if acc1 is None else acc1 + d
    y1 = jnp.maximum(acc1 + b1_ref[...], 0.0)        # BN1 bias + ReLU (f32)

    # ---- conv2 (3x3, stride 1): 9 dot-accumulates on the bf16/f32 activations ----
    y1c = y1.astype(cdtype)
    acc2 = None
    for kh in range(3):
        for kw in range(3):
            tap = shifted_tap(y1c, kh - 1, kw - 1)
            d = jnp.dot(w2_ref[kh * 3 + kw], tap,
                        preferred_element_type=jnp.float32)
            acc2 = d if acc2 is None else acc2 + d
    y2 = acc2 + b2_ref[...]                           # BN2 bias (f32)

    # ---- identity / downsample path ----
    if downsample:
        # even/even parity plane == stride-2, pad-0 subsampling for the 1x1 conv
        ident = jnp.dot(wd_ref[...], planes[0],
                        preferred_element_type=jnp.float32) + bd_ref[...]
    else:
        ident = planes[0].astype(jnp.float32)         # Cin == Ch

    # ---- residual add + final ReLU (lane-dense store) ----
    o_ref[0] = jnp.maximum(y2 + ident, 0.0).astype(o_ref.dtype)


# ----------------------------------------------------------------------------- helpers
def _fold_bn(gamma, beta, mean, var, eps=1e-5):
    scale = (gamma / jnp.sqrt(var + eps)).astype(jnp.float32)        # (Ch,)
    bias = (beta - mean * scale).astype(jnp.float32).reshape(-1, 1)  # (Ch, 1)
    return scale, bias


def encoder_residual_layer(x_nchw, params, downsample: bool, *,
                           compute_dtype=jnp.bfloat16):
    """Forward pass of EncoderResidualLayer. Input/Output are NCHW float32.

    compute_dtype: dtype of the matmul operands (bf16 recommended on v6e/v7x,
    f32 for tight numerics).  Accumulation and BN/ReLU math are always f32.
    """
    x = x_nchw.astype(jnp.float32)
    N, Cin, H, W = x.shape
    Ch = params["w1"].shape[0]
    s = 2 if downsample else 1
    if downsample:
        # TODO(synk): odd spatial sizes with stride 2 would need padded parity planes.
        assert H % 2 == 0 and W % 2 == 0, "stride-2 path assumes even H, W"
    else:
        assert Cin == Ch, "residual add requires in_channels == hidden_channels"
    H1 = (H + 2 - 3) // s + 1
    W1 = (W + 2 - 3) // s + 1
    M1 = H1 * W1
    # roll+mask trick: largest shift magnitude (W1+1) must stay inside one plane
    assert W1 + 1 < M1, "feature map too small for the roll+mask construction"

    # -- glue: channel-major spatial planes (no 9x im2col expansion) --
    if downsample:
        parts = [x[:, :, ph::2, pw::2].reshape(N, 1, Cin, M1)
                 for ph in range(2) for pw in range(2)]
        planes = jnp.concatenate(parts, axis=1)               # (N, 4, Cin, M1)
        P = 4
    else:
        planes = x.reshape(N, 1, Cin, M1)                     # (N, 1, Cin, M1)
        P = 1

    # -- fold batch elements into the lane axis: target a wide lane tile, but
    #    once lane-dense (>=128) keep >=2 batch groups so v7x's second
    #    TensorCore has work on the "parallel" grid axis. --
    TARGET_L = 2048          # per-step footprint here is << 1 MiB, safe on v7x's 64 MiB VMEM
    NB = 1
    for cand in range(2, N + 1):
        if N % cand:
            continue
        if cand * M1 > TARGET_L:
            break
        if N // cand < 2 and NB * M1 >= 128:
            continue
        NB = cand
    G = N // NB
    L = NB * M1
    if NB > 1:
        planes = (planes.reshape(G, NB, P, Cin, M1)
                        .transpose(0, 2, 3, 1, 4)
                        .reshape(G, P, Cin, L))
    else:
        planes = planes.reshape(G, P, Cin, L)

    # -- pad the lane axis to a multiple of 128 (lane-dense stores, no vst.msk) --
    Lp = ((L + 127) // 128) * 128
    if Lp != L:
        planes = jnp.pad(planes, ((0, 0), (0, 0), (0, 0), (0, Lp - L)))

    # -- compile-time border masks, one row per nonzero (dr, dc) shift --
    lane = np.arange(Lp)
    local = lane % M1
    rr, cc = local // W1, local % W1
    valid = lane < L
    masks = np.stack(
        [(valid & (rr + dr >= 0) & (rr + dr < H1)
          & (cc + dc >= 0) & (cc + dc < W1)).astype(np.float32)
         for (dr, dc) in _SHIFTS], axis=0)                    # (8, Lp)
    masks = jnp.asarray(masks).astype(compute_dtype)

    # -- weights: torch OIHW -> tap-major (9, Ch, Cin); fold BN scale into W --
    s1, b1 = _fold_bn(*params["bn1"])
    w1t = (jnp.transpose(params["w1"].astype(jnp.float32), (2, 3, 0, 1))
             .reshape(9, Ch, Cin) * s1[None, :, None]).astype(compute_dtype)
    s2, b2 = _fold_bn(*params["bn2"])
    w2t = (jnp.transpose(params["w2"].astype(jnp.float32), (2, 3, 0, 1))
             .reshape(9, Ch, Ch) * s2[None, :, None]).astype(compute_dtype)

    operands = [planes.astype(compute_dtype), masks, w1t, b1, w2t, b2]
    if downsample:
        sd, bd = _fold_bn(*params["bnd"])
        wdm = (params["wd"][:, :, 0, 0].astype(jnp.float32)
               * sd[:, None]).astype(compute_dtype)           # (Ch, Cin)
        operands += [wdm, bd]

    def resident_spec(arr):
        nd = arr.ndim
        return pl.BlockSpec(arr.shape, lambda g, _nd=nd: (0,) * _nd)

    in_specs = ([pl.BlockSpec((1, P, Cin, Lp), lambda g: (g, 0, 0, 0))]
                + [resident_spec(a) for a in operands[1:]])

    kernel = functools.partial(_residual_kernel, W1=W1, stride=s,
                               downsample=downsample)

    out = pl.pallas_call(
        kernel,
        out_shape=jax.ShapeDtypeStruct((G, Ch, Lp), jnp.float32),
        grid_spec=pltpu.PrefetchScalarGridSpec(
            num_scalar_prefetch=0,
            grid=(G,),
            in_specs=in_specs,
            out_specs=pl.BlockSpec((1, Ch, Lp), lambda g: (g, 0, 0)),
        ),
        compiler_params=pltpu.CompilerParams(
            dimension_semantics=("parallel",),
            vmem_limit_bytes=32 * 1024 * 1024,
        ),
    )(*operands)

    # -- unfold batch and drop lane padding (pure reshape when NB == 1) --
    out = out[..., :L]
    if NB > 1:
        out = (out.reshape(G, Ch, NB, M1)
                  .transpose(0, 2, 1, 3)
                  .reshape(N, Ch, H1, W1))
    else:
        out = out.reshape(N, Ch, H1, W1)
    return out


# ----------------------------------------------------------------------------- pure-JAX reference
def ref_forward(x_nchw, params, downsample: bool, eps: float = 1e-5):
    x = jnp.transpose(x_nchw, (0, 2, 3, 1)).astype(jnp.float32)

    def conv(v, w_oihw, stride, pad):
        w = jnp.transpose(w_oihw, (2, 3, 1, 0))  # HWIO
        return jax.lax.conv_general_dilated(
            v, w, (stride, stride), [(pad, pad), (pad, pad)],
            dimension_numbers=("NHWC", "HWIO", "NHWC"))

    def bn(v, g, b, m, var):
        return (v - m) / jnp.sqrt(var + eps) * g + b

    s = 2 if downsample else 1
    h = jax.nn.relu(bn(conv(x, params["w1"], s, 1), *params["bn1"]))
    h = bn(conv(h, params["w2"], 1, 1), *params["bn2"])
    ident = bn(conv(x, params["wd"], 2, 0), *params["bnd"]) if downsample else x
    out = jax.nn.relu(h + ident)
    return jnp.transpose(out, (0, 3, 1, 2))


# ----------------------------------------------------------------------------- deterministic params
def make_params(key, cin, ch, downsample):
    ks = jax.random.split(key, 6)

    def bn_params(k):
        k1, k2, k3, k4 = jax.random.split(k, 4)
        gamma = jax.random.uniform(k1, (ch,), minval=0.5, maxval=1.5)
        beta = jax.random.normal(k2, (ch,)) * 0.1
        mean = jax.random.normal(k3, (ch,)) * 0.1
        var = jax.random.uniform(k4, (ch,), minval=0.5, maxval=1.5)
        return (gamma, beta, mean, var)

    p = {
        "w1": jax.random.normal(ks[0], (ch, cin, 3, 3), jnp.float32) * 0.1,
        "bn1": bn_params(ks[1]),
        "w2": jax.random.normal(ks[2], (ch, ch, 3, 3), jnp.float32) * 0.1,
        "bn2": bn_params(ks[3]),
    }
    if downsample:
        p["wd"] = jax.random.normal(ks[4], (ch, cin, 1, 1), jnp.float32) * 0.1
        p["bnd"] = bn_params(ks[5])
    return p


# ----------------------------------------------------------------------------- main
if __name__ == "__main__":
    key = jax.random.PRNGKey(0)
    k1, k2, k3, k4 = jax.random.split(key, 4)

    # Case 1: downsample=True  (in_channels=4 -> hidden=8, stride-2 first conv)
    x1 = jax.random.normal(k1, (2, 4, 16, 16), jnp.float32)
    p1 = make_params(k2, 4, 8, downsample=True)
    r1 = ref_forward(x1, p1, True)

    y1_f32 = jax.block_until_ready(
        encoder_residual_layer(x1, p1, True, compute_dtype=jnp.float32))
    assert y1_f32.shape == (2, 8, 8, 8)
    np.testing.assert_allclose(np.asarray(y1_f32), np.asarray(r1),
                               rtol=1e-3, atol=1e-3)

    y1_bf16 = jax.block_until_ready(
        encoder_residual_layer(x1, p1, True, compute_dtype=jnp.bfloat16))
    np.testing.assert_allclose(np.asarray(y1_bf16), np.asarray(r1),
                               rtol=5e-2, atol=5e-2)   # bf16-operand tolerance

    # Case 2: downsample=False (in_channels == hidden = 8, stride-1 convs, identity skip)
    x2 = jax.random.normal(k3, (2, 8, 16, 16), jnp.float32)
    p2 = make_params(k4, 8, 8, downsample=False)
    r2 = ref_forward(x2, p2, False)

    y2_f32 = jax.block_until_ready(
        encoder_residual_layer(x2, p2, False, compute_dtype=jnp.float32))
    assert y2_f32.shape == (2, 8, 16, 16)
    np.testing.assert_allclose(np.asarray(y2_f32), np.asarray(r2),
                               rtol=1e-3, atol=1e-3)

    y2_bf16 = jax.block_until_ready(
        encoder_residual_layer(x2, p2, False, compute_dtype=jnp.bfloat16))
    np.testing.assert_allclose(np.asarray(y2_bf16), np.asarray(r2),
                               rtol=5e-2, atol=5e-2)   # bf16-operand tolerance

    print("KERNEL_OK")
</pallas_src>

<mosaic_0001>
module attributes {stable_mosaic.version = 11 : i64} {
  func.func @_residual_kernel(%arg0: i32, %arg1: memref<1x4x4x128xf32, #tpu.memory_space<vmem>>, %arg2: memref<8x128xf32, #tpu.memory_space<vmem>>, %arg3: memref<9x8x4xf32, #tpu.memory_space<vmem>>, %arg4: memref<8x1xf32, #tpu.memory_space<vmem>>, %arg5: memref<9x8x8xf32, #tpu.memory_space<vmem>>, %arg6: memref<8x1xf32, #tpu.memory_space<vmem>>, %arg7: memref<8x4xf32, #tpu.memory_space<vmem>>, %arg8: memref<8x1xf32, #tpu.memory_space<vmem>>, %arg9: memref<1x8x128xf32, #tpu.memory_space<vmem>>) attributes {dimension_semantics = [#tpu.dimension_semantics<parallel>], iteration_bounds = array<i64: 1>, scalar_prefetch = 0 : i64, scratch_operands = 0 : i64, tpu.core_type = #tpu.core_type<tc>, window_params = [{transform_indices = @transform_0, window_bounds = array<i64: 1, 4, 4, 128>}, {pipeline_mode = #tpu.pipeline_mode<synchronous>, transform_indices = @transform_1, window_bounds = array<i64: 8, 128>}, {pipeline_mode = #tpu.pipeline_mode<synchronous>, transform_indices = @transform_2, window_bounds = array<i64: 9, 8, 4>}, {pipeline_mode = #tpu.pipeline_mode<synchronous>, transform_indices = @transform_3, window_bounds = array<i64: 8, 1>}, {pipeline_mode = #tpu.pipeline_mode<synchronous>, transform_indices = @transform_4, window_bounds = array<i64: 9, 8, 8>}, {pipeline_mode = #tpu.pipeline_mode<synchronous>, transform_indices = @transform_5, window_bounds = array<i64: 8, 1>}, {pipeline_mode = #tpu.pipeline_mode<synchronous>, transform_indices = @transform_6, window_bounds = array<i64: 8, 4>}, {pipeline_mode = #tpu.pipeline_mode<synchronous>, transform_indices = @transform_7, window_bounds = array<i64: 8, 1>}, {transform_indices = @transform_8, window_bounds = array<i64: 1, 8, 128>}]} {
    %c0 = arith.constant 0 : index
    %c0_0 = arith.constant 0 : index
    %c0_1 = arith.constant 0 : index
    %c0_2 = arith.constant 0 : index
    %0 = vector.load %arg1[%c0, %c0_0, %c0_1, %c0_2] : memref<1x4x4x128xf32, #tpu.memory_space<vmem>>, vector<1x4x4x128xf32>
    %1 = vector.shape_cast %0 : vector<1x4x4x128xf32> to vector<4x4x128xf32>
    %c0_3 = arith.constant 0 : index
    %c0_4 = arith.constant 0 : index
    %2 = vector.load %arg2[%c0_3, %c0_4] : memref<8x128xf32, #tpu.memory_space<vmem>>, vector<8x128xf32>
    %3 = vector.extract_strided_slice %1 {offsets = [3, 0, 0], sizes = [1, 4, 128], strides = [1, 1, 1]} : vector<4x4x128xf32> to vector<1x4x128xf32>
    %4 = vector.shape_cast %3 : vector<1x4x128xf32> to vector<4x128xf32>
    %c9_i32 = arith.constant 9 : i32
    %5 = tpu.dynamic_rotate %4 by %c9_i32 dim 1 : vector<4x128xf32>, i32 -> vector<4x128xf32>
    %6 = vector.extract_strided_slice %2 {offsets = [0, 0], sizes = [1, 128], strides = [1, 1]} : vector<8x128xf32> to vector<1x128xf32>
    %7 = vector.broadcast %6 : vector<1x128xf32> to vector<4x128xf32>
    %8 = arith.mulf %5, %7 : vector<4x128xf32>
    %c0_5 = arith.constant 0 : index
    %c0_6 = arith.constant 0 : index
    %c0_7 = arith.constant 0 : index
    %9 = vector.load %arg3[%c0_5, %c0_6, %c0_7] : memref<9x8x4xf32, #tpu.memory_space<vmem>>, vector<1x8x4xf32>
    %10 = vector.shape_cast %9 : vector<1x8x4xf32> to vector<8x4xf32>
    %cst = arith.constant dense<0.000000e+00> : vector<8x128xf32>
    %11 = tpu.matmul %10, %8, %cst {dimension_numbers = #tpu.dot_dimension_numbers<[1], [0], [0], [1], [0, 0, 1, 1], [], []>} : vector<8x4xf32>, vector<4x128xf32>, vector<8x128xf32> -> vector<8x128xf32>
    %12 = vector.extract_strided_slice %1 {offsets = [2, 0, 0], sizes = [1, 4, 128], strides = [1, 1, 1]} : vector<4x4x128xf32> to vector<1x4x128xf32>
    %13 = vector.shape_cast %12 : vector<1x4x128xf32> to vector<4x128xf32>
    %c8_i32 = arith.constant 8 : i32
    %14 = tpu.dynamic_rotate %13 by %c8_i32 dim 1 : vector<4x128xf32>, i32 -> vector<4x128xf32>
    %15 = vector.extract_strided_slice %2 {offsets = [1, 0], sizes = [1, 128], strides = [1, 1]} : vector<8x128xf32> to vector<1x128xf32>
    %16 = vector.broadcast %15 : vector<1x128xf32> to vector<4x128xf32>
    %17 = arith.mulf %14, %16 : vector<4x128xf32>
    %c1 = arith.constant 1 : index
    %c0_8 = arith.constant 0 : index
    %c0_9 = arith.constant 0 : index
    %18 = vector.load %arg3[%c1, %c0_8, %c0_9] : memref<9x8x4xf32, #tpu.memory_space<vmem>>, vector<1x8x4xf32>
    %19 = vector.shape_cast %18 : vector<1x8x4xf32> to vector<8x4xf32>
    %cst_10 = arith.constant dense<0.000000e+00> : vector<8x128xf32>
    %20 = tpu.matmul %19, %17, %cst_10 {dimension_numbers = #tpu.dot_dimension_numbers<[1], [0], [0], [1], [0, 0, 1, 1], [], []>} : vector<8x4xf32>, vector<4x128xf32>, vector<8x128xf32> -> vector<8x128xf32>
    %21 = arith.addf %11, %20 : vector<8x128xf32>
    %22 = vector.extract_strided_slice %1 {offsets = [3, 0, 0], sizes = [1, 4, 128], strides = [1, 1, 1]} : vector<4x4x128xf32> to vector<1x4x128xf32>
    %23 = vector.shape_cast %22 : vector<1x4x128xf32> to vector<4x128xf32>
    %c8_i32_11 = arith.constant 8 : i32
    %24 = tpu.dynamic_rotate %23 by %c8_i32_11 dim 1 : vector<4x128xf32>, i32 -> vector<4x128xf32>
    %25 = vector.extract_strided_slice %2 {offsets = [1, 0], sizes = [1, 128], strides = [1, 1]} : vector<8x128xf32> to vector<1x128xf32>
    %26 = vector.broadcast %25 : vector<1x128xf32> to vector<4x128xf32>
    %27 = arith.mulf %24, %26 : vector<4x128xf32>
    %c2 = arith.constant 2 : index
    %c0_12 = arith.constant 0 : index
    %c0_13 = arith.constant 0 : index
    %28 = vector.load %arg3[%c2, %c0_12, %c0_13] : memref<9x8x4xf32, #tpu.memory_space<vmem>>, vector<1x8x4xf32>
    %29 = vector.shape_cast %28 : vector<1x8x4xf32> to vector<8x4xf32>
    %cst_14 = arith.constant dense<0.000000e+00> : vector<8x128xf32>
    %30 = tpu.matmul %29, %27, %cst_14 {dimension_numbers = #tpu.dot_dimension_numbers<[1], [0], [0], [1], [0, 0, 1, 1], [], []>} : vector<8x4xf32>, vector<4x128xf32>, vector<8x128xf32> -> vector<8x128xf32>
    %31 = arith.addf %21, %30 : vector<8x128xf32>
    %32 = vector.extract_strided_slice %1 {offsets = [1, 0, 0], sizes = [1, 4, 128], strides = [1, 1, 1]} : vector<4x4x128xf32> to vector<1x4x128xf32>
    %33 = vector.shape_cast %32 : vector<1x4x128xf32> to vector<4x128xf32>
    %c1_i32 = arith.constant 1 : i32
    %34 = tpu.dynamic_rotate %33 by %c1_i32 dim 1 : vector<4x128xf32>, i32 -> vector<4x128xf32>
    %35 = vector.extract_strided_slice %2 {offsets = [3, 0], sizes = [1, 128], strides = [1, 1]} : vector<8x128xf32> to vector<1x128xf32>
    %36 = vector.broadcast %35 : vector<1x128xf32> to vector<4x128xf32>
    %37 = arith.mulf %34, %36 : vector<4x128xf32>
    %c3 = arith.constant 3 : index
    %c0_15 = arith.constant 0 : index
    %c0_16 = arith.constant 0 : index
    %38 = vector.load %arg3[%c3, %c0_15, %c0_16] : memref<9x8x4xf32, #tpu.memory_space<vmem>>, vector<1x8x4xf32>
    %39 = vector.shape_cast %38 : vector<1x8x4xf32> to vector<8x4xf32>
    %cst_17 = arith.constant dense<0.000000e+00> : vector<8x128xf32>
    %40 = tpu.matmul %39, %37, %cst_17 {dimension_numbers = #tpu.dot_dimension_numbers<[1], [0], [0], [1], [0, 0, 1, 1], [], []>} : vector<8x4xf32>, vector<4x128xf32>, vector<8x128xf32> -> vector<8x128xf32>
    %41 = arith.addf %31, %40 : vector<8x128xf32>
    %42 = vector.extract_strided_slice %1 {offsets = [0, 0, 0], sizes = [1, 4, 128], strides = [1, 1, 1]} : vector<4x4x128xf32> to vector<1x4x128xf32>
    %43 = vector.shape_cast %42 : vector<1x4x128xf32> to vector<4x128xf32>
    %c4 = arith.constant 4 : index
    %c0_18 = arith.constant 0 : index
    %c0_19 = arith.constant 0 : index
    %44 = vector.load %arg3[%c4, %c0_18, %c0_19] : memref<9x8x4xf32, #tpu.memory_space<vmem>>, vector<1x8x4xf32>
    %45 = vector.shape_cast %44 : vector<1x8x4xf32> to vector<8x4xf32>
    %cst_20 = arith.constant dense<0.000000e+00> : vector<8x128xf32>
    %46 = tpu.matmul %45, %43, %cst_20 {dimension_numbers = #tpu.dot_dimension_numbers<[1], [0], [0], [1], [0, 0, 1, 1], [], []>} : vector<8x4xf32>, vector<4x128xf32>, vector<8x128xf32> -> vector<8x128xf32>
    %47 = arith.addf %41, %46 : vector<8x128xf32>
    %48 = vector.extract_strided_slice %1 {offsets = [1, 0, 0], sizes = [1, 4, 128], strides = [1, 1, 1]} : vector<4x4x128xf32> to vector<1x4x128xf32>
    %49 = vector.shape_cast %48 : vector<1x4x128xf32> to vector<4x128xf32>
    %c5 = arith.constant 5 : index
    %c0_21 = arith.constant 0 : index
    %c0_22 = arith.constant 0 : index
    %50 = vector.load %arg3[%c5, %c0_21, %c0_22] : memref<9x8x4xf32, #tpu.memory_space<vmem>>, vector<1x8x4xf32>
    %51 = vector.shape_cast %50 : vector<1x8x4xf32> to vector<8x4xf32>
    %cst_23 = arith.constant dense<0.000000e+00> : vector<8x128xf32>
    %52 = tpu.matmul %51, %49, %cst_23 {dimension_numbers = #tpu.dot_dimension_numbers<[1], [0], [0], [1], [0, 0, 1, 1], [], []>} : vector<8x4xf32>, vector<4x128xf32>, vector<8x128xf32> -> vector<8x128xf32>
    %53 = arith.addf %47, %52 : vector<8x128xf32>
    %54 = vector.extract_strided_slice %1 {offsets = [3, 0, 0], sizes = [1, 4, 128], strides = [1, 1, 1]} : vector<4x4x128xf32> to vector<1x4x128xf32>
    %55 = vector.shape_cast %54 : vector<1x4x128xf32> to vector<4x128xf32>
    %c1_i32_24 = arith.constant 1 : i32
    %56 = tpu.dynamic_rotate %55 by %c1_i32_24 dim 1 : vector<4x128xf32>, i32 -> vector<4x128xf32>
    %57 = vector.extract_strided_slice %2 {offsets = [3, 0], sizes = [1, 128], strides = [1, 1]} : vector<8x128xf32> to vector<1x128xf32>
    %58 = vector.broadcast %57 : vector<1x128xf32> to vector<4x128xf32>
    %59 = arith.mulf %56, %58 : vector<4x128xf32>
    %c6 = arith.constant 6 : index
    %c0_25 = arith.constant 0 : index
    %c0_26 = arith.constant 0 : index
    %60 = vector.load %arg3[%c6, %c0_25, %c0_26] : memref<9x8x4xf32, #tpu.memory_space<vmem>>, vector<1x8x4xf32>
    %61 = vector.shape_cast %60 : vector<1x8x4xf32> to vector<8x4xf32>
    %cst_27 = arith.constant dense<0.000000e+00> : vector<8x128xf32>
    %62 = tpu.matmul %61, %59, %cst_27 {dimension_numbers = #tpu.dot_dimension_numbers<[1], [0], [0], [1], [0, 0, 1, 1], [], []>} : vector<8x4xf32>, vector<4x128xf32>, vector<8x128xf32> -> vector<8x128xf32>
    %63 = arith.addf %53, %62 : vector<8x128xf32>
    %64 = vector.extract_strided_slice %1 {offsets = [2, 0, 0], sizes = [1, 4, 128], strides = [1, 1, 1]} : vector<4x4x128xf32> to vector<1x4x128xf32>
    %65 = vector.shape_cast %64 : vector<1x4x128xf32> to vector<4x128xf32>
    %c7 = arith.constant 7 : index
    %c0_28 = arith.constant 0 : index
    %c0_29 = arith.constant 0 : index
    %66 = vector.load %arg3[%c7, %c0_28, %c0_29] : memref<9x8x4xf32, #tpu.memory_space<vmem>>, vector<1x8x4xf32>
    %67 = vector.shape_cast %66 : vector<1x8x4xf32> to vector<8x4xf32>
    %cst_30 = arith.constant dense<0.000000e+00> : vector<8x128xf32>
    %68 = tpu.matmul %67, %65, %cst_30 {dimension_numbers = #tpu.dot_dimension_numbers<[1], [0], [0], [1], [0, 0, 1, 1], [], []>} : vector<8x4xf32>, vector<4x128xf32>, vector<8x128xf32> -> vector<8x128xf32>
    %69 = arith.addf %63, %68 : vector<8x128xf32>
    %70 = vector.extract_strided_slice %1 {offsets = [3, 0, 0], sizes = [1, 4, 128], strides = [1, 1, 1]} : vector<4x4x128xf32> to vector<1x4x128xf32>
    %71 = vector.shape_cast %70 : vector<1x4x128xf32> to vector<4x128xf32>
    %c8 = arith.constant 8 : index
    %c0_31 = arith.constant 0 : index
    %c0_32 = arith.constant 0 : index
    %72 = vector.load %arg3[%c8, %c0_31, %c0_32] : memref<9x8x4xf32, #tpu.memory_space<vmem>>, vector<1x8x4xf32>
    %73 = vector.shape_cast %72 : vector<1x8x4xf32> to vector<8x4xf32>
    %cst_33 = arith.constant dense<0.000000e+00> : vector<8x128xf32>
    %74 = tpu.matmul %73, %71, %cst_33 {dimension_numbers = #tpu.dot_dimension_numbers<[1], [0], [0], [1], [0, 0, 1, 1], [], []>} : vector<8x4xf32>, vector<4x128xf32>, vector<8x128xf32> -> vector<8x128xf32>
    %75 = arith.addf %69, %74 : vector<8x128xf32>
    %c0_34 = arith.constant 0 : index
    %c0_35 = arith.constant 0 : index
    %76 = vector.load %arg4[%c0_34, %c0_35] : memref<8x1xf32, #tpu.memory_space<vmem>>, vector<8x1xf32>
    %77 = vector.broadcast %76 : vector<8x1xf32> to vector<8x128xf32>
    %78 = arith.addf %75, %77 : vector<8x128xf32>
    %cst_36 = arith.constant 0.000000e+00 : f32
    %79 = vector.broadcast %cst_36 : f32 to vector<8x128xf32>
    %80 = arith.maximumf %78, %79 : vector<8x128xf32>
    %c9_i32_37 = arith.constant 9 : i32
    %81 = tpu.dynamic_rotate %80 by %c9_i32_37 dim 1 : vector<8x128xf32>, i32 -> vector<8x128xf32>
    %82 = vector.extract_strided_slice %2 {offsets = [0, 0], sizes = [1, 128], strides = [1, 1]} : vector<8x128xf32> to vector<1x128xf32>
    %83 = vector.broadcast %82 : vector<1x128xf32> to vector<8x128xf32>
    %84 = arith.mulf %81, %83 : vector<8x128xf32>
    %c0_38 = arith.constant 0 : index
    %c0_39 = arith.constant 0 : index
    %c0_40 = arith.constant 0 : index
    %85 = vector.load %arg5[%c0_38, %c0_39, %c0_40] : memref<9x8x8xf32, #tpu.memory_space<vmem>>, vector<1x8x8xf32>
    %86 = vector.shape_cast %85 : vector<1x8x8xf32> to vector<8x8xf32>
    %cst_41 = arith.constant dense<0.000000e+00> : vector<8x128xf32>
    %87 = tpu.matmul %86, %84, %cst_41 {dimension_numbers = #tpu.dot_dimension_numbers<[1], [0], [0], [1], [0, 0, 1, 1], [], []>} : vector<8x8xf32>, vector<8x128xf32>, vector<8x128xf32> -> vector<8x128xf32>
    %c8_i32_42 = arith.constant 8 : i32
    %88 = tpu.dynamic_rotate %80 by %c8_i32_42 dim 1 : vector<8x128xf32>, i32 -> vector<8x128xf32>
    %89 = vector.extract_strided_slice %2 {offsets = [1, 0], sizes = [1, 128], strides = [1, 1]} : vector<8x128xf32> to vector<1x128xf32>
    %90 = vector.broadcast %89 : vector<1x128xf32> to vector<8x128xf32>
    %91 = arith.mulf %88, %90 : vector<8x128xf32>
    %c1_43 = arith.constant 1 : index
    %c0_44 = arith.constant 0 : index
    %c0_45 = arith.constant 0 : index
    %92 = vector.load %arg5[%c1_43, %c0_44, %c0_45] : memref<9x8x8xf32, #tpu.memory_space<vmem>>, vector<1x8x8xf32>
    %93 = vector.shape_cast %92 : vector<1x8x8xf32> to vector<8x8xf32>
    %cst_46 = arith.constant dense<0.000000e+00> : vector<8x128xf32>
    %94 = tpu.matmul %93, %91, %cst_46 {dimension_numbers = #tpu.dot_dimension_numbers<[1], [0], [0], [1], [0, 0, 1, 1], [], []>} : vector<8x8xf32>, vector<8x128xf32>, vector<8x128xf32> -> vector<8x128xf32>
    %95 = arith.addf %87, %94 : vector<8x128xf32>
    %c7_i32 = arith.constant 7 : i32
    %96 = tpu.dynamic_rotate %80 by %c7_i32 dim 1 : vector<8x128xf32>, i32 -> vector<8x128xf32>
    %97 = vector.extract_strided_slice %2 {offsets = [2, 0], sizes = [1, 128], strides = [1, 1]} : vector<8x128xf32> to vector<1x128xf32>
    %98 = vector.broadcast %97 : vector<1x128xf32> to vector<8x128xf32>
    %99 = arith.mulf %96, %98 : vector<8x128xf32>
    %c2_47 = arith.constant 2 : index
    %c0_48 = arith.constant 0 : index
    %c0_49 = arith.constant 0 : index
    %100 = vector.load %arg5[%c2_47, %c0_48, %c0_49] : memref<9x8x8xf32, #tpu.memory_space<vmem>>, vector<1x8x8xf32>
    %101 = vector.shape_cast %100 : vector<1x8x8xf32> to vector<8x8xf32>
    %cst_50 = arith.constant dense<0.000000e+00> : vector<8x128xf32>
    %102 = tpu.matmul %101, %99, %cst_50 {dimension_numbers = #tpu.dot_dimension_numbers<[1], [0], [0], [1], [0, 0, 1, 1], [], []>} : vector<8x8xf32>, vector<8x128xf32>, vector<8x128xf32> -> vector<8x128xf32>
    %103 = arith.addf %95, %102 : vector<8x128xf32>
    %c1_i32_51 = arith.constant 1 : i32
    %104 = tpu.dynamic_rotate %80 by %c1_i32_51 dim 1 : vector<8x128xf32>, i32 -> vector<8x128xf32>
    %105 = vector.extract_strided_slice %2 {offsets = [3, 0], sizes = [1, 128], strides = [1, 1]} : vector<8x128xf32> to vector<1x128xf32>
    %106 = vector.broadcast %105 : vector<1x128xf32> to vector<8x128xf32>
    %107 = arith.mulf %104, %106 : vector<8x128xf32>
    %c3_52 = arith.constant 3 : index
    %c0_53 = arith.constant 0 : index
    %c0_54 = arith.constant 0 : index
    %108 = vector.load %arg5[%c3_52, %c0_53, %c0_54] : memref<9x8x8xf32, #tpu.memory_space<vmem>>, vector<1x8x8xf32>
    %109 = vector.shape_cast %108 : vector<1x8x8xf32> to vector<8x8xf32>
    %cst_55 = arith.constant dense<0.000000e+00> : vector<8x128xf32>
    %110 = tpu.matmul %109, %107, %cst_55 {dimension_numbers = #tpu.dot_dimension_numbers<[1], [0], [0], [1], [0, 0, 1, 1], [], []>} : vector<8x8xf32>, vector<8x128xf32>, vector<8x128xf32> -> vector<8x128xf32>
    %111 = arith.addf %103, %110 : vector<8x128xf32>
    %c4_56 = arith.constant 4 : index
    %c0_57 = arith.constant 0 : index
    %c0_58 = arith.constant 0 : index
    %112 = vector.load %arg5[%c4_56, %c0_57, %c0_58] : memref<9x8x8xf32, #tpu.memory_space<vmem>>, vector<1x8x8xf32>
    %113 = vector.shape_cast %112 : vector<1x8x8xf32> to vector<8x8xf32>
    %cst_59 = arith.constant dense<0.000000e+00> : vector<8x128xf32>
    %114 = tpu.matmul %113, %80, %cst_59 {dimension_numbers = #tpu.dot_dimension_numbers<[1], [0], [0], [1], [0, 0, 1, 1], [], []>} : vector<8x8xf32>, vector<8x128xf32>, vector<8x128xf32> -> vector<8x128xf32>
    %115 = arith.addf %111, %114 : vector<8x128xf32>
    %c127_i32 = arith.constant 127 : i32
    %116 = tpu.dynamic_rotate %80 by %c127_i32 dim 1 : vector<8x128xf32>, i32 -> vector<8x128xf32>
    %117 = vector.extract_strided_slice %2 {offsets = [4, 0], sizes = [1, 128], strides = [1, 1]} : vector<8x128xf32> to vector<1x128xf32>
    %118 = vector.broadcast %117 : vector<1x128xf32> to vector<8x128xf32>
    %119 = arith.mulf %116, %118 : vector<8x128xf32>
    %c5_60 = arith.constant 5 : index
    %c0_61 = arith.constant 0 : index
    %c0_62 = arith.constant 0 : index
    %120 = vector.load %arg5[%c5_60, %c0_61, %c0_62] : memref<9x8x8xf32, #tpu.memory_space<vmem>>, vector<1x8x8xf32>
    %121 = vector.shape_cast %120 : vector<1x8x8xf32> to vector<8x8xf32>
    %cst_63 = arith.constant dense<0.000000e+00> : vector<8x128xf32>
    %122 = tpu.matmul %121, %119, %cst_63 {dimension_numbers = #tpu.dot_dimension_numbers<[1], [0], [0], [1], [0, 0, 1, 1], [], []>} : vector<8x8xf32>, vector<8x128xf32>, vector<8x128xf32> -> vector<8x128xf32>
    %123 = arith.addf %115, %122 : vector<8x128xf32>
    %c121_i32 = arith.constant 121 : i32
    %124 = tpu.dynamic_rotate %80 by %c121_i32 dim 1 : vector<8x128xf32>, i32 -> vector<8x128xf32>
    %125 = vector.extract_strided_slice %2 {offsets = [5, 0], sizes = [1, 128], strides = [1, 1]} : vector<8x128xf32> to vector<1x128xf32>
    %126 = vector.broadcast %125 : vector<1x128xf32> to vector<8x128xf32>
    %127 = arith.mulf %124, %126 : vector<8x128xf32>
    %c6_64 = arith.constant 6 : index
    %c0_65 = arith.constant 0 : index
    %c0_66 = arith.constant 0 : index
    %128 = vector.load %arg5[%c6_64, %c0_65, %c0_66] : memref<9x8x8xf32, #tpu.memory_space<vmem>>, vector<1x8x8xf32>
    %129 = vector.shape_cast %128 : vector<1x8x8xf32> to vector<8x8xf32>
    %cst_67 = arith.constant dense<0.000000e+00> : vector<8x128xf32>
    %130 = tpu.matmul %129, %127, %cst_67 {dimension_numbers = #tpu.dot_dimension_numbers<[1], [0], [0], [1], [0, 0, 1, 1], [], []>} : vector<8x8xf32>, vector<8x128xf32>, vector<8x128xf32> -> vector<8x128xf32>
    %131 = arith.addf %123, %130 : vector<8x128xf32>
    %c120_i32 = arith.constant 120 : i32
    %132 = tpu.dynamic_rotate %80 by %c120_i32 dim 1 : vector<8x128xf32>, i32 -> vector<8x128xf32>
    %133 = vector.extract_strided_slice %2 {offsets = [6, 0], sizes = [1, 128], strides = [1, 1]} : vector<8x128xf32> to vector<1x128xf32>
    %134 = vector.broadcast %133 : vector<1x128xf32> to vector<8x128xf32>
    %135 = arith.mulf %132, %134 : vector<8x128xf32>
    %c7_68 = arith.constant 7 : index
    %c0_69 = arith.constant 0 : index
    %c0_70 = arith.constant 0 : index
    %136 = vector.load %arg5[%c7_68, %c0_69, %c0_70] : memref<9x8x8xf32, #tpu.memory_space<vmem>>, vector<1x8x8xf32>
    %137 = vector.shape_cast %136 : vector<1x8x8xf32> to vector<8x8xf32>
    %cst_71 = arith.constant dense<0.000000e+00> : vector<8x128xf32>
    %138 = tpu.matmul %137, %135, %cst_71 {dimension_numbers = #tpu.dot_dimension_numbers<[1], [0], [0], [1], [0, 0, 1, 1], [], []>} : vector<8x8xf32>, vector<8x128xf32>, vector<8x128xf32> -> vector<8x128xf32>
    %139 = arith.addf %131, %138 : vector<8x128xf32>
    %c119_i32 = arith.constant 119 : i32
    %140 = tpu.dynamic_rotate %80 by %c119_i32 dim 1 : vector<8x128xf32>, i32 -> vector<8x128xf32>
    %141 = vector.extract_strided_slice %2 {offsets = [7, 0], sizes = [1, 128], strides = [1, 1]} : vector<8x128xf32> to vector<1x128xf32>
    %142 = vector.broadcast %141 : vector<1x128xf32> to vector<8x128xf32>
    %143 = arith.mulf %140, %142 : vector<8x128xf32>
    %c8_72 = arith.constant 8 : index
    %c0_73 = arith.constant 0 : index
    %c0_74 = arith.constant 0 : index
    %144 = vector.load %arg5[%c8_72, %c0_73, %c0_74] : memref<9x8x8xf32, #tpu.memory_space<vmem>>, vector<1x8x8xf32>
    %145 = vector.shape_cast %144 : vector<1x8x8xf32> to vector<8x8xf32>
    %cst_75 = arith.constant dense<0.000000e+00> : vector<8x128xf32>
    %146 = tpu.matmul %145, %143, %cst_75 {dimension_numbers = #tpu.dot_dimension_numbers<[1], [0], [0], [1], [0, 0, 1, 1], [], []>} : vector<8x8xf32>, vector<8x128xf32>, vector<8x128xf32> -> vector<8x128xf32>
    %147 = arith.addf %139, %146 : vector<8x128xf32>
    %c0_76 = arith.constant 0 : index
    %c0_77 = arith.constant 0 : index
    %148 = vector.load %arg6[%c0_76, %c0_77] : memref<8x1xf32, #tpu.memory_space<vmem>>, vector<8x1xf32>
    %149 = vector.broadcast %148 : vector<8x1xf32> to vector<8x128xf32>
    %150 = arith.addf %147, %149 : vector<8x128xf32>
    %c0_78 = arith.constant 0 : index
    %c0_79 = arith.constant 0 : index
    %151 = vector.load %arg7[%c0_78, %c0_79] : memref<8x4xf32, #tpu.memory_space<vmem>>, vector<8x4xf32>
    %152 = vector.extract_strided_slice %1 {offsets = [0, 0, 0], sizes = [1, 4, 128], strides = [1, 1, 1]} : vector<4x4x128xf32> to vector<1x4x128xf32>
    %153 = vector.shape_cast %152 : vector<1x4x128xf32> to vector<4x128xf32>
    %cst_80 = arith.constant dense<0.000000e+00> : vector<8x128xf32>
    %154 = tpu.matmul %151, %153, %cst_80 {dimension_numbers = #tpu.dot_dimension_numbers<[1], [0], [0], [1], [0, 0, 1, 1], [], []>} : vector<8x4xf32>, vector<4x128xf32>, vector<8x128xf32> -> vector<8x128xf32>
    %c0_81 = arith.constant 0 : index
    %c0_82 = arith.constant 0 : index
    %155 = vector.load %arg8[%c0_81, %c0_82] : memref<8x1xf32, #tpu.memory_space<vmem>>, vector<8x1xf32>
    %156 = vector.broadcast %155 : vector<8x1xf32> to vector<8x128xf32>
    %157 = arith.addf %154, %156 : vector<8x128xf32>
    %158 = arith.addf %150, %157 : vector<8x128xf32>
    %cst_83 = arith.constant 0.000000e+00 : f32
    %159 = vector.broadcast %cst_83 : f32 to vector<8x128xf32>
    %160 = arith.maximumf %158, %159 : vector<8x128xf32>
    %c0_84 = arith.constant 0 : index
    %c0_85 = arith.constant 0 : index
    %c0_86 = arith.constant 0 : index
    %161 = vector.load %arg9[%c0_84, %c0_85, %c0_86] : memref<1x8x128xf32, #tpu.memory_space<vmem>>, vector<1x8x128xf32>
    %162 = vector.shape_cast %161 : vector<1x8x128xf32> to vector<8x128xf32>
    %163 = vector.shape_cast %160 : vector<8x128xf32> to vector<1x8x128xf32>
    tpu.vector_store %arg9[%c0_84, %c0_85, %c0_86], %163 {strides = array<i32>} : memref<1x8x128xf32, #tpu.memory_space<vmem>>, vector<1x8x128xf32>,
    return
  }
  func.func @transform_0(%arg0: i32) -> (i32, i32, i32, i32) {
    %c0_i32 = arith.constant 0 : i32
    %c0_i32_0 = arith.constant 0 : i32
    %c0_i32_1 = arith.constant 0 : i32
    %c0_i32_2 = arith.constant 0 : i32
    return %arg0, %c0_i32, %c0_i32_0, %c0_i32_1 : i32, i32, i32, i32
  }
  func.func @transform_1(%arg0: i32) -> (i32, i32) {
    %c0_i32 = arith.constant 0 : i32
    %c0_i32_0 = arith.constant 0 : i32
    %c0_i32_1 = arith.constant 0 : i32
    return %c0_i32, %c0_i32_0 : i32, i32
  }
  func.func @transform_2(%arg0: i32) -> (i32, i32, i32) {
    %c0_i32 = arith.constant 0 : i32
    %c0_i32_0 = arith.constant 0 : i32
    %c0_i32_1 = arith.constant 0 : i32
    %c0_i32_2 = arith.constant 0 : i32
    return %c0_i32, %c0_i32_0, %c0_i32_1 : i32, i32, i32
  }
  func.func @transform_3(%arg0: i32) -> (i32, i32) {
    %c0_i32 = arith.constant 0 : i32
    %c0_i32_0 = arith.constant 0 : i32
    %c0_i32_1 = arith.constant 0 : i32
    return %c0_i32, %c0_i32_0 : i32, i32
  }
  func.func @transform_4(%arg0: i32) -> (i32, i32, i32) {
    %c0_i32 = arith.constant 0 : i32
    %c0_i32_0 = arith.constant 0 : i32
    %c0_i32_1 = arith.constant 0 : i32
    %c0_i32_2 = arith.constant 0 : i32
    return %c0_i32, %c0_i32_0, %c0_i32_1 : i32, i32, i32
  }
  func.func @transform_5(%arg0: i32) -> (i32, i32) {
    %c0_i32 = arith.constant 0 : i32
    %c0_i32_0 = arith.constant 0 : i32
    %c0_i32_1 = arith.constant 0 : i32
    return %c0_i32, %c0_i32_0 : i32, i32
  }
  func.func @transform_6(%arg0: i32) -> (i32, i32) {
    %c0_i32 = arith.constant 0 : i32
    %c0_i32_0 = arith.constant 0 : i32
    %c0_i32_1 = arith.constant 0 : i32
    return %c0_i32, %c0_i32_0 : i32, i32
  }
  func.func @transform_7(%arg0: i32) -> (i32, i32) {
    %c0_i32 = arith.constant 0 : i32
    %c0_i32_0 = arith.constant 0 : i32
    %c0_i32_1 = arith.constant 0 : i32
    return %c0_i32, %c0_i32_0 : i32, i32
  }
  func.func @transform_8(%arg0: i32) -> (i32, i32, i32) {
    %c0_i32 = arith.constant 0 : i32
    %c0_i32_0 = arith.constant 0 : i32
    %c0_i32_1 = arith.constant 0 : i32
    return %arg0, %c0_i32, %c0_i32_0 : i32, i32, i32
  }
}

</mosaic_0001>

<bundles_post_ra>
// kernel: tpu_custom_call.1
= control target key start
LH: loop header
LB: loop body
LE: loop exit
PB: predicated region body
PF: predicated region fallthrough
CT: control target
= control target key end

     0   :  { %s1846_s9 = smov 8   ;;  %v1847_v3 = vmov 0.0   ;;  %vm1848_vm0 = vmmov 0   ;;  %s2142_s0 = inlined_call_operand.vmem [shape: f32[1,4,4,128], index: 0, kind: input, shape index: {}]   ;;  %s2143_s1 = inlined_call_operand.vmem [shape: f32[8,128], index: 1, kind: input, shape index: {}]   ;;  %s2144_s2 = inlined_call_operand.vmem [shape: f32[9,8,4], index: 2, kind: input, shape index: {}]   ;;  %s2145_s3 = inlined_call_operand.vmem [shape: f32[8,1], index: 3, kind: input, shape index: {}]   ;;  %s2146_s4 = inlined_call_operand.vmem [shape: f32[9,8,8], index: 4, kind: input, shape index: {}]   ;;  %s2147_s5 = inlined_call_operand.vmem [shape: f32[8,1], index: 5, kind: input, shape index: {}]   ;;  %s2148_s6 = inlined_call_operand.vmem [shape: f32[8,4], index: 6, kind: input, shape index: {}]   ;;  %s2149_s7 = inlined_call_operand.vmem [shape: f32[8,1], index: 7, kind: input, shape index: {}]   ;;  %s2150_s8 = inlined_call_operand.hbm [shape: f32[1,8,128], index: 8, kind: output, shape index: {}]  }
   0x1   :  { %v1906_v0 = vld [vmem:[%s2142_s0 + $0x8] sm:$0xf]  ;;  %v1911_v1 = vld [vmem:[%s2142_s0 + $0xc] sm:$0xf]  ;;  %v1920_v2 = vld [vmem:[%s2142_s0 + $0x4] sm:$0xf]  ;;  %1693 = vmatprep.subr.mxu0 %v1847_v3  ;;  %1738 = vmatprep.subr.mxu1 %v1847_v3 }
   0x2   :  { %43 = vrot.lane.b32.xlu0 %v1906_v0, %s1846_s9  ;;  %206 = vrot.lane.b32.xlu1 %v1911_v1, %s1846_s9 }
   0x3   :  { %1695 = vmatprep.mubr.msk.f32.mxu0 %vm1848_vm0, %v1847_v3  ;;  %1740 = vmatprep.mubr.msk.f32.mxu1 %vm1848_vm0, %v1847_v3 }
   0x4   :  { %13 = vsyncpa [#allocation3], 0  ;;  %s1849_s12 = smov 9   ;;  %s1850_s13 = smov 1   ;;  %v772_v4 = vld [vmem:[%s2145_s3] sm:$0xff]  ;;  %v1851_v5 = vmov 0   ;;  %v37_v6 = vlaneseq }
   0x5   :  { %1820 = vset.pattern.permute.xlu1 %v1851_v5  ;;  %1821 = vset.pattern.permute.xlu0 %v1851_v5  ;;  %v1943_v9 = vld [vmem:[%s2143_s1] sm:$0xff]  ;;  %vm56_vm1 = vcmask 1043456   ;;  %v1610_v15 = vld [vmem:[%s2144_s2 + $0x8] sm:$0xff]  ;;  %vm52_vm2 = vcmask 31744   ;;  %v1615_v24 = vld [vmem:[%s2144_s2 + $0x10] sm:$0xff]  ;;  %s1853_s16 = smov 121  }
   0x6   :  { %35 = vrot.lane.b32.xlu0 %v1911_v1, %s1849_s12  ;;  %288 = vrot.lane.b32.xlu1 %v1920_v2, %s1850_s13  ;;  %v1937_v7 = vshrl.u32 %v37_v6, 7  ;;  %v42_v21 = vld [vmem:[%s2144_s2] sm:$0xff]  ;;  %v1618_v26 = vld [vmem:[%s2144_s2 + $0x18] sm:$0xff]  ;;  %s1854_s17 = smov 127   ;;  %s1855_s3 = smov 119   ;;  %vm789_vm3 = vcmask 64512  }
   0x7   :  { %v1992_v27 = vld [vmem:[%s2142_s0] sm:$0xf]  ;;  %v1624_v31 = vld [vmem:[%s2144_s2 + $0x28] sm:$0xff]  ;;  %v1627_v32 = vld [vmem:[%s2144_s2 + $0x30] sm:$0xff]  ;;  %s1856_s18 = smov 120  }
   0x8   :  { %v47_v8 = vsub.s32 1, %v1937_v7  ;;  %v39_v11 = vsub.s32 0, %v1937_v7  ;;  %v292_v17 = vsub.s32 3, %v1937_v7  ;;  %v1621_v28 = vld [vmem:[%s2144_s2 + $0x20] sm:$0xff]  ;;  %v1630_v33 = vld [vmem:[%s2144_s2 + $0x38] sm:$0xff]  ;;  %v1636_v6 = vld [vmem:[%s2146_s4 + $0x8] sm:$0xff] }
   0x9   :  { %v1633_v34 = vld [vmem:[%s2144_s2 + $0x40] sm:$0xff]  ;;  %s1852_s2 = smov 7  }
   0xa   :  { %532 = vrot.lane.b32.xlu0 %v1911_v1, %s1850_s13  ;;  %775 = vperm.xlu1 %1820, %v772_v4   ;;  %v1946_v10 = vrot.slane %v1943_v9, %v47_v8  ;;  %v1954_v16 = vrot.slane %v1943_v9, %v39_v11  ;;  %v1968_v22 = vrot.slane %v1943_v9, %v292_v17  ;;  %v940_v11 = vsub.s32 2, %v1937_v7 }
  0x74   :  { %v44_v12 = vpop.permute.xlu0 %43  ;;  %v207_v13 = vpop.permute.xlu1 %206 }
  0x75   :  { %v49_v14 = vmul.f32 %v1946_v10, %v44_v12  ;;  %v208_v20 = vmul.f32 %v207_v13, %v1946_v10  ;;  %v783_v13 = vld [vmem:[%s2146_s4] sm:$0xff] }
  0x77   :  { %1694 = vmatpush3.msk.msra.mxu0 %vm56_vm1, %v49_v14 }
  0x78   :  { %1696 = vmatmul.mubr.msk.f32.vlgmr.msra.gmra.mrb[0].mxu0 %vm52_vm2, %v1610_v15  ;;  %v36_v18 = vpop.permute.xlu0 %35  ;;  %1698 = vmatprep.subr.mxu0 %v1847_v3  ;;  %v289_v23 = vpop.permute.xlu1 %288 }
  0x79   :  { %v41_v19 = vmul.f32 %v1954_v16, %v36_v18  ;;  %1700 = vmatprep.mubr.msk.f32.mxu0 %vm1848_vm0, %v1847_v3  ;;  %v294_v25 = vmul.f32 %v1968_v22, %v289_v23  ;;  %v1641_v18 = vld [vmem:[%s2146_s4 + $0x18] sm:$0xff]  ;;  %v1261_v23 = vsub.s32 5, %v1937_v7 }
  0x7b   :  { %1699 = vmatpush3.msk.msra.mxu0 %vm56_vm1, %v41_v19  ;;  %v1178_v19 = vsub.s32 4, %v1937_v7 }
  0x7c   :  { %1701 = vmatmul.mubr.msk.f32.vlgmr.msra.gmra.mrb[2].mxu0 %vm52_vm2, %v42_v21  ;;  %1703 = vmatprep.subr.mxu0 %v1847_v3  ;;  %v533_v29 = vpop.permute.xlu0 %532 }
  0x7d   :  { %1704 = vmatpush3.msk.msra.mxu0 %vm56_vm1, %v208_v20  ;;  %1705 = vmatprep.mubr.msk.f32.mxu0 %vm1848_vm0, %v1847_v3  ;;  %v534_v30 = vmul.f32 %v533_v29, %v1968_v22  ;;  %v1179_v20 = vrot.slane %v1943_v9, %v1178_v19 }
  0x7e   :  { %1708 = vmatprep.subr.mxu0 %v1847_v3 }
  0x80   :  { %1706 = vmatmul.mubr.msk.f32.vlgmr.msra.gmra.mrb[4].mxu0 %vm52_vm2, %v1615_v24 }
  0x81   :  { %1709 = vmatpush3.msk.msra.mxu0 %vm56_vm1, %v294_v25  ;;  %1710 = vmatprep.mubr.msk.f32.mxu0 %vm1848_vm0, %v1847_v3  ;;  %v1262_v25 = vrot.slane %v1943_v9, %v1261_v23 }
  0x82   :  { %1713 = vmatprep.subr.mxu0 %v1847_v3 }
  0x84   :  { %1711 = vmatmul.mubr.msk.f32.vlgmr.msra.gmra.mrb[6].mxu0 %vm52_vm2, %v1618_v26 }
  0x85   :  { %1714 = vmatpush3.msk.msra.mxu0 %vm56_vm1, %v1992_v27  ;;  %1715 = vmatprep.mubr.msk.f32.mxu0 %vm1848_vm0, %v1847_v3 }
  0x86   :  { %1718 = vmatprep.subr.mxu0 %v1847_v3 }
  0x88   :  { %1716 = vmatmul.mubr.msk.f32.vlgmr.msra.gmra.mrb[8].mxu0 %vm52_vm2, %v1621_v28  ;;  %v1645_v28 = vld [vmem:[%s2146_s4 + $0x28] sm:$0xff] }
  0x89   :  { %1719 = vmatpush3.msk.msra.mxu0 %vm56_vm1, %v1920_v2  ;;  %1720 = vmatprep.mubr.msk.f32.mxu0 %vm1848_vm0, %v1847_v3  ;;  %v776_v59 = vpop.permute.xlu1 %775 }
  0x8a   :  { %1723 = vmatprep.subr.mxu0 %v1847_v3 }
  0x8c   :  { %1721 = vmatmul.mubr.msk.f32.vlgmr.msra.gmra.mrb[10].mxu0 %vm52_vm2, %v1624_v31 }
  0x8d   :  { %1724 = vmatpush3.msk.msra.mxu0 %vm56_vm1, %v534_v30  ;;  %1725 = vmatprep.mubr.msk.f32.mxu0 %vm1848_vm0, %v1847_v3  ;;  %v1344_v30 = vsub.s32 6, %v1937_v7 }
  0x8e   :  { %1728 = vmatprep.subr.mxu0 %v1847_v3 }
  0x8f   :  { %v1345_v31 = vrot.slane %v1943_v9, %v1344_v30 }
  0x90   :  { %1726 = vmatmul.mubr.msk.f32.vlgmr.msra.gmra.mrb[12].mxu0 %vm52_vm2, %v1627_v32 }
  0x91   :  { %1729 = vmatpush3.msk.msra.mxu0 %vm56_vm1, %v1906_v0  ;;  %1730 = vmatprep.mubr.msk.f32.mxu0 %vm1848_vm0, %v1847_v3  ;;  %v1514_v0 = vld [vmem:[%s2149_s7] sm:$0xff] }
  0x92   :  { %1733 = vmatprep.subr.mxu0 %v1847_v3 }
  0x94   :  { %1731 = vmatmul.mubr.msk.f32.vlgmr.msra.gmra.mrb[14].mxu0 %vm52_vm2, %v1630_v33  ;;  %v1647_v33 = vld [vmem:[%s2146_s4 + $0x30] sm:$0xff] }
  0x95   :  { %1734 = vmatpush3.msk.msra.mxu0 %vm56_vm1, %v1911_v1  ;;  %1735 = vmatprep.mubr.msk.f32.mxu0 %vm1848_vm0, %v1847_v3  ;;  %v1506_v1 = vld [vmem:[%s2147_s5] sm:$0xff] }
  0x98   :  { %1736 = vmatmul.mubr.msk.f32.vlgmr.msra.gmra.mrb[16].mxu0 %vm52_vm2, %v1633_v34  ;;  %v1427_v34 = vsub.s32 7, %v1937_v7  ;;  %v1651_v7 = vld [vmem:[%s2146_s4 + $0x40] sm:$0xff] }
 0x14b   :  { %v126_v35 = vpop.f32.mrb[0].mxu0 }
 0x14c   :  { %v1697_v36 = vpop.f32.mrb[1].mxu0 }
 0x14d   :  { %v1428_v36 = vrot.slane %v1943_v9, %v1427_v34 }
 0x14f   :  { %v202_v37 = vpop.f32.mrb[2].mxu0 }
 0x150   :  { %v203_v38 = vadd.f32 %v202_v37, %v126_v35  ;;  %v1702_v39 = vpop.f32.mrb[3].mxu0 }
 0x153   :  { %v283_v40 = vpop.f32.mrb[4].mxu0 }
 0x154   :  { %v287_v41 = vadd.f32 %v283_v40, %v203_v38  ;;  %v1707_v42 = vpop.f32.mrb[5].mxu0  ;;  %v1649_v38 = vld [vmem:[%s2146_s4 + $0x38] sm:$0xff] }
 0x157   :  { %v369_v43 = vpop.f32.mrb[6].mxu0 }
 0x158   :  { %v373_v44 = vadd.f32 %v369_v43, %v287_v41  ;;  %v1712_v45 = vpop.f32.mrb[7].mxu0 }
 0x15b   :  { %v448_v46 = vpop.f32.mrb[8].mxu0 }
 0x15c   :  { %v452_v47 = vadd.f32 %v448_v46, %v373_v44  ;;  %v1717_v48 = vpop.f32.mrb[9].mxu0 }
 0x15f   :  { %v527_v49 = vpop.f32.mrb[10].mxu0 }
 0x160   :  { %v531_v50 = vadd.f32 %v527_v49, %v452_v47  ;;  %v1722_v51 = vpop.f32.mrb[11].mxu0 }
 0x163   :  { %v609_v52 = vpop.f32.mrb[12].mxu0 }
 0x164   :  { %v613_v53 = vadd.f32 %v609_v52, %v531_v50  ;;  %v1727_v54 = vpop.f32.mrb[13].mxu0 }
 0x167   :  { %v688_v55 = vpop.f32.mrb[14].mxu0 }
 0x168   :  { %v692_v56 = vadd.f32 %v688_v55, %v613_v53  ;;  %v1732_v57 = vpop.f32.mrb[15].mxu0 }
 0x16b   :  { %v767_v58 = vpop.f32.mrb[16].mxu0 }
 0x16c   :  { %v771_v60 = vadd.f32 %v767_v58, %v692_v56  ;;  %v1737_v61 = vpop.f32.mrb[17].mxu0 }
 0x16e   :  { %v778_v62 = vadd.f32 %v776_v59, %v771_v60 }
 0x170   :  { %v779_v63 = vmax.f32 %v778_v62, 0.0 }
 0x172   :  { %780 = vrot.lane.b32.xlu1 %v779_v63, %s1849_s12  ;;  %784 = vrot.lane.b32.xlu0 %v779_v63, %s1846_s9 }
 0x176   :  { %1019 = vrot.lane.b32.xlu1 %v779_v63, %s1850_s13  ;;  %936 = vrot.lane.b32.xlu0 %v779_v63, %s1852_s2 }
 0x17a   :  { %1257 = vrot.lane.b32.xlu1 %v779_v63, %s1853_s16  ;;  %1174 = vrot.lane.b32.xlu0 %v779_v63, %s1854_s17  ;;  %s1857_s16 = smov [#allocation2]  }
 0x17e   :  { %1423 = vrot.lane.b32.xlu1 %v779_v63, %s1855_s3  ;;  %1340 = vrot.lane.b32.xlu0 %v779_v63, %s1856_s18 }
 0x182   :  { %1517 = vperm.xlu1 %1820, %v1514_v0   ;;  %1509 = vperm.xlu0 %1821, %v1506_v1  }
 0x1e4   :  { %v781_v2 = vpop.permute.xlu1 %780  ;;  %v785_v4 = vpop.permute.xlu0 %784 }
 0x1e5   :  { %v786_v5 = vmul.f32 %v785_v4, %v1946_v10  ;;  %v782_v8 = vmul.f32 %v781_v2, %v1954_v16  ;;  %v941_v10 = vrot.slane %v1943_v9, %v940_v11  ;;  %v1639_v16 = vld [vmem:[%s2146_s4 + $0x10] sm:$0xff]  ;;  %v1513_v9 = vld [vmem:[%s2148_s6] sm:$0xff] }
 0x1e7   :  { %1739 = vmatpush3.msra.mxu1 %v786_v5 }
 0x1e8   :  { %1741 = vmatmul.mubr.msk.f32.vlgmr.msra.gmra.mrb[0].mxu1 %vm789_vm3, %v1636_v6  ;;  %1743 = vmatprep.subr.mxu1 %v1847_v3  ;;  %v937_v12 = vpop.permute.xlu0 %936  ;;  %v1020_v15 = vpop.permute.xlu1 %1019 }
 0x1e9   :  { %1744 = vmatpush3.msra.mxu1 %v782_v8  ;;  %1745 = vmatprep.mubr.msk.f32.mxu1 %vm1848_vm0, %v1847_v3  ;;  %v942_v14 = vmul.f32 %v941_v10, %v937_v12  ;;  %v1021_v17 = vmul.f32 %v1020_v15, %v1968_v22  ;;  %v1643_v22 = vld [vmem:[%s2146_s4 + $0x20] sm:$0xff]  ;;  %s1602_s4 = sshll.u32 %s1857_s16, 4  ;;  %s1603_s4 = int_to_ptr.vmem [resolvable:$true] %s1602_s4 }
 0x1ea   :  { %1748 = vmatprep.subr.mxu1 %v1847_v3  ;;  %s1822_s17 = scalar_lea.vmem %s1603_s4, 128  ;;  %p1827_p1 = scmp.lt.s32.totalorder %s1603_s4, %s1603_s4 }
 0x1eb   :  { %p1823_p0 = scmp.ne.s32.totalorder %s1603_s4, %s1822_s17  ;;  %p1828_p2 = scmp.lt.s32.totalorder %s1822_s17, %s1822_s17 }
 0x1ec   :  { %v1175_v21 = vpop.permute.xlu0 %1174  ;;  %v1258_v26 = vpop.permute.xlu1 %1257 }
 0x1ed   :  { %v1180_v24 = vmul.f32 %v1179_v20, %v1175_v21  ;;  %v1263_v29 = vmul.f32 %v1262_v25, %v1258_v26  ;;  %p1829_p3 = por %p1828_p2, %p1827_p1 }
 0x1ef   :  { %p1830_p4 = pnand %p1829_p3, %p1823_p0 }
 0x1f0   :  { %1746 = vmatmul.mubr.msk.f32.vlgmr.msra.gmra.mrb[0].mxu1 %vm789_vm3, %v783_v13  ;;  %v1341_v32 = vpop.permute.xlu0 %1340  ;;  %v1424_v37 = vpop.permute.xlu1 %1423 }
 0x1f1   :  { %1749 = vmatpush3.msra.mxu1 %v942_v14  ;;  %1750 = vmatprep.mubr.msk.f32.mxu1 %vm1848_vm0, %v1847_v3  ;;  %v1346_v35 = vmul.f32 %v1345_v31, %v1341_v32  ;;  %v1429_v39 = vmul.f32 %v1428_v36, %v1424_v37 }
 0x1f2   :  { %1753 = vmatprep.subr.mxu1 %v1847_v3 }
 0x1f8   :  { %1751 = vmatmul.mubr.msk.f32.vlgmr.msra.gmra.mrb[0].mxu1 %vm789_vm3, %v1639_v16 }
 0x1f9   :  { %1754 = vmatpush3.msra.mxu1 %v1021_v17  ;;  %1755 = vmatprep.mubr.msk.f32.mxu1 %vm1848_vm0, %v1847_v3 }
 0x1fa   :  { %1758 = vmatprep.subr.mxu1 %v1847_v3 }
 0x200   :  { %1756 = vmatmul.mubr.msk.f32.vlgmr.msra.gmra.mrb[0].mxu1 %vm789_vm3, %v1641_v18 }
 0x201   :  { %1759 = vmatpush3.msra.mxu1 %v779_v63  ;;  %1760 = vmatprep.mubr.msk.f32.mxu1 %vm1848_vm0, %v1847_v3  ;;  %v1518_v40 = vpop.permute.xlu1 %1517  ;;  %v1510_v41 = vpop.permute.xlu0 %1509 }
 0x202   :  { %1763 = vmatprep.subr.mxu1 %v1847_v3  ;;  %v1788_v42 = vadd.f32 %v1518_v40, %v1510_v41 }
 0x208   :  { %1761 = vmatmul.mubr.msk.f32.vlgmr.msra.gmra.mrb[0].mxu1 %vm789_vm3, %v1643_v22 }
 0x209   :  { %1764 = vmatpush3.msra.mxu1 %v1180_v24  ;;  %1765 = vmatprep.mubr.msk.f32.mxu1 %vm1848_vm0, %v1847_v3 }
 0x20a   :  { %1768 = vmatprep.subr.mxu1 %v1847_v3 }
 0x210   :  { %1766 = vmatmul.mubr.msk.f32.vlgmr.msra.gmra.mrb[0].mxu1 %vm789_vm3, %v1645_v28 }
 0x211   :  { %1769 = vmatpush3.msra.mxu1 %v1263_v29  ;;  %1770 = vmatprep.mubr.msk.f32.mxu1 %vm1848_vm0, %v1847_v3 }
 0x212   :  { %1773 = vmatprep.subr.mxu1 %v1847_v3 }
 0x218   :  { %1771 = vmatmul.mubr.msk.f32.vlgmr.msra.gmra.mrb[0].mxu1 %vm789_vm3, %v1647_v33 }
 0x219   :  { %1774 = vmatpush3.msra.mxu1 %v1346_v35  ;;  %1775 = vmatprep.mubr.msk.f32.mxu1 %vm1848_vm0, %v1847_v3 }
 0x21a   :  { %1778 = vmatprep.subr.mxu1 %v1847_v3 }
 0x220   :  { %1776 = vmatmul.mubr.msk.f32.vlgmr.msra.gmra.mrb[0].mxu1 %vm789_vm3, %v1649_v38 }
 0x221   :  { %1779 = vmatpush3.msra.mxu1 %v1429_v39  ;;  %1780 = vmatprep.mubr.msk.f32.mxu1 %vm1848_vm0, %v1847_v3 }
 0x222   :  { %1783 = vmatprep.subr.mxu1 %v1847_v3 }
 0x228   :  { %1781 = vmatmul.mubr.msk.f32.vlgmr.msra.gmra.mrb[0].mxu1 %vm789_vm3, %v1651_v7 }
 0x229   :  { %1784 = vmatpush3.msk.msra.mxu1 %vm56_vm1, %v1992_v27  ;;  %1785 = vmatprep.mubr.msk.f32.mxu1 %vm1848_vm0, %v1847_v3 }
 0x230   :  { %1786 = vmatmul.mubr.msk.f32.vlgmr.msra.gmra.mrb[0].mxu1 %vm52_vm2, %v1513_v9 }
 0x303   :  { %v1589_v43 = vpop.f32.mrb[0].mxu1 }
 0x304   :  { %v1789_v44 = vadd.f32 %v1788_v42, %v1589_v43  ;;  %v1787_v45 = vpop.f32.mrb[1].mxu1 }
 0x306   :  { %v1594_v46 = vmax.f32 %v1789_v44, 0.0 }
 0x308   :  { %1595 = vst [vmem:[#allocation2] sm:$0xff] %v1594_v46 }
 0x309   :  { %1833 = shalt.err (!%p1830_p4)
}
 0x30a   :  { %s1834_s18 = scalar_lea.hbm %s2150_s8, 128 }
 0x30b   :  { %p1835_p5 = scmp.ne.s32.totalorder %s2150_s8, %s1834_s18  ;;  %p1838_p6 = scmp.lt.u32.totalorder %s1834_s18, %s2150_s8 }
 0x30d   :  { %p1840_p7 = pnand %p1838_p6, %p1835_p5 }
 0x30f   :  { %1843 = shalt.err (!%p1840_p7)
}
 0x310   :  { %1605 = dma.vmem_to_hbm [thread:$0]  %s1603_s4, 128, %s2150_s8, [#allocation3]  }
 0x311   :  { %1844 = dma.done.wait [#allocation3], 128  }
 0x312   :  { %1845 = vsyncadd [#allocation3], 4294967168 }
 0x313   :  { %1609 = vsyncpa [#allocation3], 1 }

</bundles_post_ra>
